<compile_context>
chip_gen: v7x
topology: tpu7x:2x2x1
jax: 0.10.0
libtpu: 0.0.40
codegen_flags: <defaults>
</compile_context>

<pallas_src>
import functools

import jax
import jax.numpy as jnp
from jax import lax
from jax.experimental import pallas as pl
from jax.experimental.pallas import tpu as pltpu


def _cdiv(a, b):
    return -(-a // b)


def _vmem_budget_bytes():
    """Per-core VMEM budget used for tile sizing (generation aware)."""
    try:
        cap = int(pltpu.get_tpu_info().vmem_capacity_bytes)
    except Exception:      # keep working if the query is unavailable
        cap = 64 << 20     # v7x per-core physical VMEM (most conservative)
    # Stay well clear of physical capacity so double-buffering + compiler
    # scratch always fit: 64 MiB -> 40 MiB (v7x), 128 MiB -> 80 MiB (v5e/v6e).
    return int(min(cap * 5 // 8, 96 << 20))


def _vmem_limit(need, budget):
    return int(min(max(need + (8 << 20), 16 << 20), max(budget, need + (2 << 20))))


# ---------------------------------------------------------------------------
# Kernel A: per-output-channel sum / sum-of-squares of y = w2T @ xT
#           (BatchNorm batch statistics).  Grid = (2, batch blocks):
#           outer axis is a 2-way megacore split, inner axis accumulates.
#           xT is streamed exactly once; w2T is VMEM-resident.
# ---------------------------------------------------------------------------
def _stats_kernel(xT_ref, wT_ref, sum_ref, ssq_ref, *, tb):
    @pl.when(pl.program_id(1) == 0)
    def _():
        sum_ref[...] = jnp.zeros_like(sum_ref)
        ssq_ref[...] = jnp.zeros_like(ssq_ref)

    w = wT_ref[...]                                            # (Cout, K) bf16

    def body(b, carry):
        y = jnp.dot(w, xT_ref[b], preferred_element_type=jnp.float32)  # (Cout, HW) f32
        sum_ref[...] += jnp.sum(y, axis=1, keepdims=True)[None]
        ssq_ref[...] += jnp.sum(y * y, axis=1, keepdims=True)[None]
        return carry

    lax.fori_loop(0, tb, body, 0, unroll=tb <= 4)


# ---------------------------------------------------------------------------
# Kernel B: fused conv + BatchNorm apply, output written directly in NCHW:
#           out[b] = (w2T @ xT[b]) * scale + shift.   Grid = (batch blocks,
#           Cout blocks), fully parallel; x block constant across the inner
#           Cout axis, w/scale/shift constant when a single Cout tile fits.
# ---------------------------------------------------------------------------
def _conv_bn_kernel(xT_ref, wT_ref, scale_ref, shift_ref, o_ref, *, tb):
    w = wT_ref[...]                                            # (tn, K) bf16
    scale = scale_ref[...]                                     # (tn, 1) f32
    shift = shift_ref[...]                                     # (tn, 1) f32

    def body(b, carry):
        y = jnp.dot(w, xT_ref[b], preferred_element_type=jnp.float32)  # (tn, HW) f32
        o_ref[b] = (y * scale + shift).astype(o_ref.dtype)
        return carry

    lax.fori_loop(0, tb, body, 0, unroll=tb <= 4)


def _conv_stats(xT, wT, *, tb, nb, vmem_limit):
    _, K, HW = xT.shape
    Cout = wT.shape[0]
    return pl.pallas_call(
        functools.partial(_stats_kernel, tb=tb),
        out_shape=(
            jax.ShapeDtypeStruct((2, Cout, 1), jnp.float32),
            jax.ShapeDtypeStruct((2, Cout, 1), jnp.float32),
        ),
        grid_spec=pltpu.PrefetchScalarGridSpec(
            num_scalar_prefetch=0,
            grid=(2, nb),                               # (megacore split, accumulate)
            in_specs=[
                pl.BlockSpec((tb, K, HW), lambda p, i: (p * nb + i, 0, 0)),
                pl.BlockSpec((Cout, K), lambda p, i: (0, 0)),     # resident weights
            ],
            out_specs=[
                pl.BlockSpec((1, Cout, 1), lambda p, i: (p, 0, 0)),
                pl.BlockSpec((1, Cout, 1), lambda p, i: (p, 0, 0)),
            ],
        ),
        compiler_params=pltpu.CompilerParams(
            dimension_semantics=("parallel", "arbitrary"),
            vmem_limit_bytes=vmem_limit),
    )(xT, wT)


def _conv_bn_apply(xT, wT, scale, shift, *, N, tbo, tn, vmem_limit):
    _, K, HW = xT.shape
    Cout = wT.shape[0]
    nb = N // tbo
    nc = _cdiv(Cout, tn)
    return pl.pallas_call(
        functools.partial(_conv_bn_kernel, tb=tbo),
        out_shape=jax.ShapeDtypeStruct((N, Cout, HW), jnp.float32),
        grid_spec=pltpu.PrefetchScalarGridSpec(
            num_scalar_prefetch=0,
            grid=(nb, nc),                 # x block constant across inner Cout axis
            in_specs=[
                pl.BlockSpec((tbo, K, HW), lambda i, j: (i, 0, 0)),
                pl.BlockSpec((tn, K), lambda i, j: (j, 0)),
                pl.BlockSpec((tn, 1), lambda i, j: (j, 0)),
                pl.BlockSpec((tn, 1), lambda i, j: (j, 0)),
            ],
            out_specs=pl.BlockSpec((tbo, tn, HW), lambda i, j: (i, j, 0)),
        ),
        compiler_params=pltpu.CompilerParams(
            dimension_semantics=("parallel", "parallel"),
            vmem_limit_bytes=vmem_limit),
    )(xT, wT, scale, shift)


@functools.partial(jax.jit, static_argnames=("eps", "stats_batch_tile",
                                             "apply_batch_tile", "cout_tile"))
def downsample_d(x_nchw, conv_w, gamma, beta, *, eps=1e-5,
                 stats_batch_tile=None, apply_batch_tile=None, cout_tile=None):
    """Forward of DownsampleD: Conv2d(k=2, s=2, bias=False) -> BatchNorm2d (batch stats).

    x_nchw : (N, Cin, H, W) float32
    conv_w : (Cout, Cin, 2, 2) float32
    gamma, beta : (Cout,) float32
    returns (N, Cout, H//2, W//2) float32
    """
    N, Cin, H, W = x_nchw.shape
    Cout = conv_w.shape[0]
    Ho, Wo = H // 2, W // 2
    HW = Ho * Wo
    K = Cin * 4
    M = N * HW                                  # elements per channel for BN stats

    budget = _vmem_budget_bytes()
    slab = K * HW * 2                           # one image of xT in bf16

    # --- stats-pass tiling: batch tile tb, outer 2-way split (v7x megacore) --
    fixed_a = 2 * Cout * K * 2 + Cout * HW * 4 + 8 * Cout * 4 + (6 << 20)
    avail_a = max(budget - fixed_a, 2 * slab)
    tb = max(1, min((2 << 20) // slab, avail_a // (2 * slab), _cdiv(N, 2)))
    if stats_batch_tile is not None:
        tb = max(1, min(int(stats_batch_tile), N))
    nb = _cdiv(_cdiv(N, tb), 2)
    Np = 2 * nb * tb
    need_a = 2 * tb * slab + fixed_a

    # --- apply-pass tiling: batch tile tbo (divides N), Cout tile tn ---------
    def need_b(tb_, tn_):
        return (2 * tb_ * slab            # xT tile, bf16, double-buffered
                + 2 * tn_ * K * 2         # weight tile, bf16
                + 4 * tn_ * 4             # scale + shift
                + 3 * tb_ * tn_ * HW * 4  # out tile (double-buffered) + f32 temp
                + (6 << 20))              # compiler scratch slack

    divisors = [d for d in range(1, N + 1) if N % d == 0]
    tbo = max([d for d in divisors if d * slab <= (2 << 20)] or [1])
    if apply_batch_tile is not None:
        if N % int(apply_batch_tile) != 0:
            raise ValueError(f"apply_batch_tile={apply_batch_tile} must divide N={N}")
        tbo = int(apply_batch_tile)

    def pick_tn(tb_):
        if cout_tile is not None:
            return int(cout_tile)
        if need_b(tb_, Cout) <= budget:
            return Cout                         # full width -> weights fully resident
        for cand in range(Cout - Cout % 8, 7, -8):
            if Cout % cand == 0 and need_b(tb_, cand) <= budget:
                return cand
        return Cout  # TODO(synk): pathological Cout*HW -- accept the oversize tile

    tn = pick_tn(tbo)
    while apply_batch_tile is None and tbo > 1 and need_b(tbo, tn) > budget:
        tbo = max(d for d in divisors if d < tbo)
        tn = pick_tn(tbo)
    if tn != Cout and (tn % 8 != 0 or Cout % tn != 0):
        raise ValueError(f"cout_tile={tn} must be Cout or a multiple of 8 dividing Cout")

    # --- glue: space-to-depth so the conv becomes per-image matmuls ----------
    # TODO(synk): this NCHW -> (N, Cin*2*2, Ho*Wo) relayout is still a standalone
    # XLA transpose (done in bf16 to halve its HBM traffic); folding it into the
    # kernels needs an in-kernel (Cin,2,2) gather that does not lower cleanly for
    # arbitrary Cin/W, so it is left to XLA.
    xb = x_nchw.astype(jnp.bfloat16)[:, :, :2 * Ho, :2 * Wo]
    xT = xb.reshape(N, Cin, Ho, 2, Wo, 2)
    xT = jnp.transpose(xT, (0, 1, 3, 5, 2, 4)).reshape(N, K, HW)
    if Np != N:
        # zero images contribute nothing to sum/ssq; mean/var divide by the true M.
        xT = jnp.pad(xT, ((0, Np - N), (0, 0), (0, 0)))

    # weights (Cout, Cin, 2, 2) -> (Cout, K), bf16.  No transpose, no padding.
    wT = conv_w.astype(jnp.bfloat16).reshape(Cout, K)

    # --- hot path 1: BN batch statistics (streams xT exactly once) -----------
    s, ssq = _conv_stats(xT, wT, tb=tb, nb=nb,
                         vmem_limit=_vmem_limit(need_a, budget))
    s = jnp.sum(s, axis=0)                      # combine the 2 megacore halves
    ssq = jnp.sum(ssq, axis=0)                  # (Cout, 1)

    # --- tiny scalar work: fold stats + gamma/beta into a per-channel affine -
    mean = s / M
    var = jnp.maximum(ssq / M - mean * mean, 0.0)   # biased var (PyTorch BN training)
    invstd = lax.rsqrt(var + eps)
    scale = gamma.astype(jnp.float32)[:, None] * invstd        # (Cout, 1)
    shift = beta.astype(jnp.float32)[:, None] - mean * scale   # (Cout, 1)

    # --- hot path 2: fused conv + BN apply, written directly in NCHW ---------
    # (output kept f32 to match the PyTorch module's interface; switch o_ref's
    #  dtype to bf16 here if the downstream consumer tolerates it.)
    out = _conv_bn_apply(xT, wT, scale, shift, N=N, tbo=tbo, tn=tn,
                         vmem_limit=_vmem_limit(need_b(tbo, tn), budget))
    # (N, Cout, Ho*Wo) -> (N, Cout, Ho, Wo): contiguous reshape, no relayout.
    return out.reshape(N, Cout, Ho, Wo)


# ---------------------------------------------------------------------------
# Reference (pure JAX)
# ---------------------------------------------------------------------------
def _reference(x_nchw, conv_w, gamma, beta, eps=1e-5, matmul_dtype=jnp.bfloat16):
    """Conv(2x2, s=2) + training-mode BN.  matmul_dtype=bf16 mirrors the kernel's
    reduced-precision MXU inputs; matmul_dtype=f32 is the exact module semantics."""
    N, Cin, H, W = x_nchw.shape
    Cout = conv_w.shape[0]
    Ho, Wo = H // 2, W // 2
    xs = x_nchw[:, :, :2 * Ho, :2 * Wo]
    xp = xs.reshape(N, Cin, Ho, 2, Wo, 2)
    xp = jnp.transpose(xp, (0, 2, 4, 1, 3, 5)).reshape(N * Ho * Wo, Cin * 4)
    w2 = conv_w.reshape(Cout, Cin * 4).T
    y = jnp.dot(xp.astype(matmul_dtype), w2.astype(matmul_dtype),
                preferred_element_type=jnp.float32)
    mean = y.mean(axis=0, keepdims=True)
    var = (y * y).mean(axis=0, keepdims=True) - mean * mean
    out = (y - mean) * lax.rsqrt(var + eps) * gamma[None, :] + beta[None, :]
    out = out.reshape(N, Ho, Wo, Cout)
    return jnp.transpose(out, (0, 3, 1, 2))


if __name__ == "__main__":
    key = jax.random.PRNGKey(0)
    k1, k2, k3, k4 = jax.random.split(key, 4)

    # --- Test 1: small shapes implied by the module spec ---------------------
    N, Cin, Cout, H, W = 2, 4, 8, 16, 16
    x = jax.random.normal(k1, (N, Cin, H, W), dtype=jnp.float32)
    conv_w = jax.random.normal(k2, (Cout, Cin, 2, 2), dtype=jnp.float32) * 0.25
    gamma = jnp.ones((Cout,), dtype=jnp.float32)        # fresh BatchNorm2d init
    beta = jnp.zeros((Cout,), dtype=jnp.float32)

    out = jax.block_until_ready(downsample_d(x, conv_w, gamma, beta))
    assert out.shape == (N, Cout, H // 2, W // 2), out.shape
    ref_bf16 = _reference(x, conv_w, gamma, beta, matmul_dtype=jnp.bfloat16)
    ref_f32 = _reference(x, conv_w, gamma, beta, matmul_dtype=jnp.float32)
    err = float(jnp.max(jnp.abs(out - ref_bf16)))
    assert jnp.allclose(out, ref_bf16, atol=2e-3, rtol=2e-3), err
    err32 = float(jnp.max(jnp.abs(out - ref_f32)))
    assert jnp.allclose(out, ref_f32, atol=1e-1, rtol=1e-1), err32

    # --- Test 2: bigger spatial size, non-multiple-of-128 Cout, default tiles
    N2, Cin2, Cout2, H2, W2 = 2, 4, 160, 32, 32
    x2 = jax.random.normal(k3, (N2, Cin2, H2, W2), dtype=jnp.float32)
    conv_w2 = jax.random.normal(k4, (Cout2, Cin2, 2, 2), dtype=jnp.float32) * 0.25
    gamma2 = jnp.linspace(0.5, 1.5, Cout2, dtype=jnp.float32)
    beta2 = jnp.linspace(-0.2, 0.2, Cout2, dtype=jnp.float32)

    out2 = jax.block_until_ready(downsample_d(x2, conv_w2, gamma2, beta2))
    assert out2.shape == (N2, Cout2, H2 // 2, W2 // 2), out2.shape
    ref2 = _reference(x2, conv_w2, gamma2, beta2, matmul_dtype=jnp.bfloat16)
    err2 = float(jnp.max(jnp.abs(out2 - ref2)))
    assert jnp.allclose(out2, ref2, atol=2e-3, rtol=2e-3), err2

    # --- Test 3: exercise the fallback paths (Cout tiling nc=2, batch-padded
    #             stats, per-image apply tiles) via the override knobs --------
    out3 = jax.block_until_ready(
        downsample_d(x2, conv_w2, gamma2, beta2,
                     stats_batch_tile=2, apply_batch_tile=1, cout_tile=80))
    err3 = float(jnp.max(jnp.abs(out3 - ref2)))
    assert jnp.allclose(out3, ref2, atol=2e-3, rtol=2e-3), err3
    assert jnp.allclose(out3, out2, atol=1e-3, rtol=1e-3)

    print("KERNEL_OK")
</pallas_src>

<mosaic_0001>
module attributes {stable_mosaic.version = 11 : i64} {
  func.func @_stats_kernel(%arg0: i32, %arg1: i32, %arg2: memref<1x16x64xbf16, #tpu.memory_space<vmem>>, %arg3: memref<8x16xbf16, #tpu.memory_space<vmem>>, %arg4: memref<1x8x1xf32, #tpu.memory_space<vmem>>, %arg5: memref<1x8x1xf32, #tpu.memory_space<vmem>>) attributes {dimension_semantics = [#tpu.dimension_semantics<parallel>, #tpu.dimension_semantics<arbitrary>], iteration_bounds = array<i64: 2, 1>, scalar_prefetch = 0 : i64, scratch_operands = 0 : i64, tpu.core_type = #tpu.core_type<tc>, window_params = [{transform_indices = @transform_0, window_bounds = array<i64: 1, 16, 64>}, {pipeline_mode = #tpu.pipeline_mode<synchronous>, transform_indices = @transform_1, window_bounds = array<i64: 8, 16>}, {transform_indices = @transform_2, window_bounds = array<i64: 1, 8, 1>}, {transform_indices = @transform_3, window_bounds = array<i64: 1, 8, 1>}]} {
    %c0_i32 = arith.constant 0 : i32
    %0 = arith.cmpi eq, %arg1, %c0_i32 : i32
    %1 = arith.extui %0 : i1 to i32
    %c0_i32_0 = arith.constant 0 : i32
    %2 = arith.cmpi ne, %1, %c0_i32_0 : i32
    scf.if %2 {
      %cst_19 = arith.constant 0.000000e+00 : f32
      %21 = vector.broadcast %cst_19 : f32 to vector<1x8x1xf32>
      %c0_20 = arith.constant 0 : index
      %c0_21 = arith.constant 0 : index
      %c0_22 = arith.constant 0 : index
      %22 = vector.load %arg4[%c0_20, %c0_21, %c0_22] : memref<1x8x1xf32, #tpu.memory_space<vmem>>, vector<1x8x1xf32>
      tpu.vector_store %arg4[%c0_20, %c0_21, %c0_22], %21 {strides = array<i32>} : memref<1x8x1xf32, #tpu.memory_space<vmem>>, vector<1x8x1xf32>,
      %cst_23 = arith.constant 0.000000e+00 : f32
      %23 = vector.broadcast %cst_23 : f32 to vector<1x8x1xf32>
      %c0_24 = arith.constant 0 : index
      %c0_25 = arith.constant 0 : index
      %c0_26 = arith.constant 0 : index
      %24 = vector.load %arg5[%c0_24, %c0_25, %c0_26] : memref<1x8x1xf32, #tpu.memory_space<vmem>>, vector<1x8x1xf32>
      tpu.vector_store %arg5[%c0_24, %c0_25, %c0_26], %23 {strides = array<i32>} : memref<1x8x1xf32, #tpu.memory_space<vmem>>, vector<1x8x1xf32>,
    } else {
    }
    %c0 = arith.constant 0 : index
    %c0_1 = arith.constant 0 : index
    %3 = vector.load %arg3[%c0, %c0_1] : memref<8x16xbf16, #tpu.memory_space<vmem>>, vector<8x16xbf16>
    %c0_i32_2 = arith.constant 0 : i32
    %4 = arith.index_cast %c0_i32_2 : i32 to index
    %c0_3 = arith.constant 0 : index
    %c0_4 = arith.constant 0 : index
    %5 = vector.load %arg2[%4, %c0_3, %c0_4] : memref<1x16x64xbf16, #tpu.memory_space<vmem>>, vector<1x16x64xbf16>
    %6 = vector.shape_cast %5 : vector<1x16x64xbf16> to vector<16x64xbf16>
    %cst = arith.constant dense<0.000000e+00> : vector<8x64xf32>
    %7 = tpu.matmul %3, %6, %cst {dimension_numbers = #tpu.dot_dimension_numbers<[1], [0], [0], [1], [0, 0, 1, 1], [], []>} : vector<8x16xbf16>, vector<16x64xbf16>, vector<8x64xf32> -> vector<8x64xf32>
    %c0_5 = arith.constant 0 : index
    %c0_6 = arith.constant 0 : index
    %c0_7 = arith.constant 0 : index
    %8 = vector.load %arg4[%c0_5, %c0_6, %c0_7] : memref<1x8x1xf32, #tpu.memory_space<vmem>>, vector<1x8x1xf32>
    %cst_8 = arith.constant dense<0.000000e+00> : vector<8xf32>
    %9 = vector.multi_reduction <add>, %7, %cst_8 [1] : vector<8x64xf32> to vector<8xf32>
    %10 = vector.shape_cast %9 : vector<8xf32> to vector<8x1xf32>
    %11 = vector.shape_cast %10 : vector<8x1xf32> to vector<1x8x1xf32>
    %12 = arith.addf %8, %11 : vector<1x8x1xf32>
    %c0_9 = arith.constant 0 : index
    %c0_10 = arith.constant 0 : index
    %c0_11 = arith.constant 0 : index
    %13 = vector.load %arg4[%c0_9, %c0_10, %c0_11] : memref<1x8x1xf32, #tpu.memory_space<vmem>>, vector<1x8x1xf32>
    tpu.vector_store %arg4[%c0_9, %c0_10, %c0_11], %12 {strides = array<i32>} : memref<1x8x1xf32, #tpu.memory_space<vmem>>, vector<1x8x1xf32>,
    %c0_12 = arith.constant 0 : index
    %c0_13 = arith.constant 0 : index
    %c0_14 = arith.constant 0 : index
    %14 = vector.load %arg5[%c0_12, %c0_13, %c0_14] : memref<1x8x1xf32, #tpu.memory_space<vmem>>, vector<1x8x1xf32>
    %15 = arith.mulf %7, %7 : vector<8x64xf32>
    %cst_15 = arith.constant dense<0.000000e+00> : vector<8xf32>
    %16 = vector.multi_reduction <add>, %15, %cst_15 [1] : vector<8x64xf32> to vector<8xf32>
    %17 = vector.shape_cast %16 : vector<8xf32> to vector<8x1xf32>
    %18 = vector.shape_cast %17 : vector<8x1xf32> to vector<1x8x1xf32>
    %19 = arith.addf %14, %18 : vector<1x8x1xf32>
    %c0_16 = arith.constant 0 : index
    %c0_17 = arith.constant 0 : index
    %c0_18 = arith.constant 0 : index
    %20 = vector.load %arg5[%c0_16, %c0_17, %c0_18] : memref<1x8x1xf32, #tpu.memory_space<vmem>>, vector<1x8x1xf32>
    tpu.vector_store %arg5[%c0_16, %c0_17, %c0_18], %19 {strides = array<i32>} : memref<1x8x1xf32, #tpu.memory_space<vmem>>, vector<1x8x1xf32>,
    %c1_i32 = arith.constant 1 : i32
    return
  }
  func.func @transform_0(%arg0: i32, %arg1: i32) -> (i32, i32, i32) {
    %c1_i32 = arith.constant 1 : i32
    %0 = arith.muli %arg0, %c1_i32 : i32
    %1 = arith.addi %0, %arg1 : i32
    %c0_i32 = arith.constant 0 : i32
    %c0_i32_0 = arith.constant 0 : i32
    %c0_i32_1 = arith.constant 0 : i32
    return %1, %c0_i32, %c0_i32_0 : i32, i32, i32
  }
  func.func @transform_1(%arg0: i32, %arg1: i32) -> (i32, i32) {
    %c0_i32 = arith.constant 0 : i32
    %c0_i32_0 = arith.constant 0 : i32
    %c0_i32_1 = arith.constant 0 : i32
    return %c0_i32, %c0_i32_0 : i32, i32
  }
  func.func @transform_2(%arg0: i32, %arg1: i32) -> (i32, i32, i32) {
    %c0_i32 = arith.constant 0 : i32
    %c0_i32_0 = arith.constant 0 : i32
    %c0_i32_1 = arith.constant 0 : i32
    return %arg0, %c0_i32, %c0_i32_0 : i32, i32, i32
  }
  func.func @transform_3(%arg0: i32, %arg1: i32) -> (i32, i32, i32) {
    %c0_i32 = arith.constant 0 : i32
    %c0_i32_0 = arith.constant 0 : i32
    %c0_i32_1 = arith.constant 0 : i32
    return %arg0, %c0_i32, %c0_i32_0 : i32, i32, i32
  }
}

module attributes {stable_mosaic.version = 11 : i64} {
  func.func @_conv_bn_kernel(%arg0: i32, %arg1: i32, %arg2: memref<2x16x64xbf16, #tpu.memory_space<vmem>>, %arg3: memref<8x16xbf16, #tpu.memory_space<vmem>>, %arg4: memref<8x1xf32, #tpu.memory_space<vmem>>, %arg5: memref<8x1xf32, #tpu.memory_space<vmem>>, %arg6: memref<2x8x64xf32, #tpu.memory_space<vmem>>) attributes {dimension_semantics = [#tpu.dimension_semantics<parallel>, #tpu.dimension_semantics<parallel>], iteration_bounds = array<i64: 1, 1>, scalar_prefetch = 0 : i64, scratch_operands = 0 : i64, tpu.core_type = #tpu.core_type<tc>, window_params = [{transform_indices = @transform_0, window_bounds = array<i64: 2, 16, 64>}, {transform_indices = @transform_1, window_bounds = array<i64: 8, 16>}, {transform_indices = @transform_2, window_bounds = array<i64: 8, 1>}, {transform_indices = @transform_3, window_bounds = array<i64: 8, 1>}, {transform_indices = @transform_4, window_bounds = array<i64: 2, 8, 64>}]} {
    %c0 = arith.constant 0 : index
    %c0_0 = arith.constant 0 : index
    %0 = vector.load %arg3[%c0, %c0_0] : memref<8x16xbf16, #tpu.memory_space<vmem>>, vector<8x16xbf16>
    %c0_1 = arith.constant 0 : index
    %c0_2 = arith.constant 0 : index
    %1 = vector.load %arg4[%c0_1, %c0_2] : memref<8x1xf32, #tpu.memory_space<vmem>>, vector<8x1xf32>
    %c0_3 = arith.constant 0 : index
    %c0_4 = arith.constant 0 : index
    %2 = vector.load %arg5[%c0_3, %c0_4] : memref<8x1xf32, #tpu.memory_space<vmem>>, vector<8x1xf32>
    %c0_i32 = arith.constant 0 : i32
    %3 = arith.index_cast %c0_i32 : i32 to index
    %c0_5 = arith.constant 0 : index
    %c0_6 = arith.constant 0 : index
    %4 = vector.load %arg2[%3, %c0_5, %c0_6] : memref<2x16x64xbf16, #tpu.memory_space<vmem>>, vector<1x16x64xbf16>
    %5 = vector.shape_cast %4 : vector<1x16x64xbf16> to vector<16x64xbf16>
    %cst = arith.constant dense<0.000000e+00> : vector<8x64xf32>
    %6 = tpu.matmul %0, %5, %cst {dimension_numbers = #tpu.dot_dimension_numbers<[1], [0], [0], [1], [0, 0, 1, 1], [], []>} : vector<8x16xbf16>, vector<16x64xbf16>, vector<8x64xf32> -> vector<8x64xf32>
    %7 = vector.broadcast %1 : vector<8x1xf32> to vector<8x64xf32>
    %8 = arith.mulf %6, %7 : vector<8x64xf32>
    %9 = vector.broadcast %2 : vector<8x1xf32> to vector<8x64xf32>
    %10 = arith.addf %8, %9 : vector<8x64xf32>
    %11 = arith.index_cast %c0_i32 : i32 to index
    %c0_7 = arith.constant 0 : index
    %c0_8 = arith.constant 0 : index
    %12 = vector.load %arg6[%11, %c0_7, %c0_8] : memref<2x8x64xf32, #tpu.memory_space<vmem>>, vector<1x8x64xf32>
    %13 = vector.shape_cast %12 : vector<1x8x64xf32> to vector<8x64xf32>
    %14 = vector.shape_cast %10 : vector<8x64xf32> to vector<1x8x64xf32>
    tpu.vector_store %arg6[%11, %c0_7, %c0_8], %14 {strides = array<i32>} : memref<2x8x64xf32, #tpu.memory_space<vmem>>, vector<1x8x64xf32>,
    %c1_i32 = arith.constant 1 : i32
    %15 = arith.index_cast %c1_i32 : i32 to index
    %c0_9 = arith.constant 0 : index
    %c0_10 = arith.constant 0 : index
    %16 = vector.load %arg2[%15, %c0_9, %c0_10] : memref<2x16x64xbf16, #tpu.memory_space<vmem>>, vector<1x16x64xbf16>
    %17 = vector.shape_cast %16 : vector<1x16x64xbf16> to vector<16x64xbf16>
    %cst_11 = arith.constant dense<0.000000e+00> : vector<8x64xf32>
    %18 = tpu.matmul %0, %17, %cst_11 {dimension_numbers = #tpu.dot_dimension_numbers<[1], [0], [0], [1], [0, 0, 1, 1], [], []>} : vector<8x16xbf16>, vector<16x64xbf16>, vector<8x64xf32> -> vector<8x64xf32>
    %19 = vector.broadcast %1 : vector<8x1xf32> to vector<8x64xf32>
    %20 = arith.mulf %18, %19 : vector<8x64xf32>
    %21 = vector.broadcast %2 : vector<8x1xf32> to vector<8x64xf32>
    %22 = arith.addf %20, %21 : vector<8x64xf32>
    %23 = arith.index_cast %c1_i32 : i32 to index
    %c0_12 = arith.constant 0 : index
    %c0_13 = arith.constant 0 : index
    %24 = vector.load %arg6[%23, %c0_12, %c0_13] : memref<2x8x64xf32, #tpu.memory_space<vmem>>, vector<1x8x64xf32>
    %25 = vector.shape_cast %24 : vector<1x8x64xf32> to vector<8x64xf32>
    %26 = vector.shape_cast %22 : vector<8x64xf32> to vector<1x8x64xf32>
    tpu.vector_store %arg6[%23, %c0_12, %c0_13], %26 {strides = array<i32>} : memref<2x8x64xf32, #tpu.memory_space<vmem>>, vector<1x8x64xf32>,
    %c2_i32 = arith.constant 2 : i32
    return
  }
  func.func @transform_0(%arg0: i32, %arg1: i32) -> (i32, i32, i32) {
    %c0_i32 = arith.constant 0 : i32
    %c0_i32_0 = arith.constant 0 : i32
    %c0_i32_1 = arith.constant 0 : i32
    return %arg0, %c0_i32, %c0_i32_0 : i32, i32, i32
  }
  func.func @transform_1(%arg0: i32, %arg1: i32) -> (i32, i32) {
    %c0_i32 = arith.constant 0 : i32
    %c0_i32_0 = arith.constant 0 : i32
    return %arg1, %c0_i32 : i32, i32
  }
  func.func @transform_2(%arg0: i32, %arg1: i32) -> (i32, i32) {
    %c0_i32 = arith.constant 0 : i32
    %c0_i32_0 = arith.constant 0 : i32
    return %arg1, %c0_i32 : i32, i32
  }
  func.func @transform_3(%arg0: i32, %arg1: i32) -> (i32, i32) {
    %c0_i32 = arith.constant 0 : i32
    %c0_i32_0 = arith.constant 0 : i32
    return %arg1, %c0_i32 : i32, i32
  }
  func.func @transform_4(%arg0: i32, %arg1: i32) -> (i32, i32, i32) {
    %c0_i32 = arith.constant 0 : i32
    %c0_i32_0 = arith.constant 0 : i32
    return %arg0, %arg1, %c0_i32 : i32, i32, i32
  }
}

</mosaic_0001>

<bundles_post_ra>
// kernel: downsample_d.2
= control target key start
LH: loop header
LB: loop body
LE: loop exit
PB: predicated region body
PF: predicated region fallthrough
CT: control target
= control target key end

     0   :  { %s462_s12 = smov 0   ;;  %s464_s13 = smov 0   ;;  %s505_s0 = inlined_call_operand.vmem [shape: bf16[2,16,64], index: 0, kind: input, shape index: {}]   ;;  %s506_s1 = inlined_call_operand.vmem [shape: bf16[8,16], index: 1, kind: input, shape index: {}]   ;;  %s507_s2 = inlined_call_operand.vmem [shape: f32[2,8,1], index: 2, kind: output, shape index: {0}]   ;;  %s508_s3 = inlined_call_operand.vmem [shape: f32[2,8,1], index: 3, kind: output, shape index: {1}]  }
   0x1   :  { %s466_s14 = smov 0  }
   0x2 LB: > { %s26_s15 = sadd.s32 1, %s434_s13  ;;  %p371_p0 = scmp.ge.s32.totalorder %s438_s14, 1  ;;  %s438_s14 = sphi %s466_s14, %s14_s14   ;;  %s434_s13 = sphi %s464_s13, %s510_s13   ;;  %s430_s12 = sphi %s462_s12, %s509_s12  }
   0x3   : > { %p28_p1 = scmp.ge.s32.totalorder %s26_s15, 2  ;;  %p156_p2 = scmp.lt.s32.totalorder %s438_s14, 3 }
   0x5   : > { %s512_s15 = smov (%p28_p1, %s26_s15), 0  ;;  %p157_p3 = pnand %p371_p0, %p156_p2 }
   0x6   : > { %p185_p4 = scmp.lt.s32.totalorder (!%p157_p3), %s430_s12, 1  ;;  %v440_v0 = vmov (!%p157_p3), 0.0   ;;  %vm441_vm0 = vmmov (!%p157_p3), 0   ;;  %v207_v2 = vld [vmem:[%s506_s1] sm:$0xf] (!%p157_p3)  ;;  %vm216_vm1 = vcmask (!%p157_p3), 130048  }
   0x7   : > { %160 = sbr.rel (%p157_p3) target bundleno = 383 (0x17f), region = 28  ;;  %383 = vmatprep.subr.bf16.mxu0 (!%p157_p3), %v440_v0  ;;  %385 = vmatprep.mubr.msk.bf16.mxu0 (!%p157_p3), %vm441_vm0, %v440_v0  ;;  %vm204_vm2 = vcmask (!%p157_p3), 7168   ;;  %vm261_vm3 = vcmask (!%p157_p3), 523264  }
   0xe   : > { %s514_s12 = smov (!%p185_p4, %s430_s12), 1 }
   0xf   : > { %s380_s16 = sshll.u32 %s514_s12, 3 }
  0x10   : > { %s189_s19 = scalar_lea.vmem %s505_s0, %s380_s16  ;;  %s194_s24 = scalar_lea.vmem %s507_s2, %s380_s16 }
  0x11   : > { %v415_v1 = vld [vmem:[%s189_s19] sm:$0xff]   ;;  %205 = vst.msk [vmem:[%s194_s24] sm:$0xff] %vm204_vm2, %v440_v0  ;;  %s198_s27 = scalar_lea.vmem %s508_s3, %s380_s16 }
  0x12   : > { %384 = vmatpush3.bf16.msra.mxu0 %v415_v1  ;;  %206 = vst.msk [vmem:[%s198_s27] sm:$0xff] %vm204_vm2, %v440_v0 }
  0x15   : > { %386 = vmatmul.mubr.msk.bf16.vlgmr.msra.gmra.mrb[0].mxu0 %vm216_vm1, %v207_v2 }
  0x18   : > { %v260_v10 = vld [vmem:[%s194_s24] sm:$0xff] }
  0x19   : > { %v268_v13 = vld [vmem:[%s198_s27] sm:$0xff] }
  0xe8   : > { %v254_v3 = vpop.f32.mrb[0].mxu0 }
  0xe9   : > { %v269_v4 = vmul.f32 %v254_v3, %v254_v3  ;;  %v387_v5 = vpop.f32.mrb[1].mxu0  ;;  %v262_v6 = vsel %vm261_vm3, %v254_v3, 0.0 }
  0xea   : > { %263 = vadd.xlane.f32.xlu0 %v262_v6  ;;  %v257_v7 = vpop.f32.mrb[2].mxu0 }
  0xeb   : > { %v388_v8 = vpop.f32.mrb[3].mxu0  ;;  %v270_v9 = vsel %vm261_vm3, %v269_v4, 0.0 }
  0xee   : > { %271 = vadd.xlane.f32.xlu0 %v270_v9 }
 0x177   : > { %v264_v11 = vpop.xlane.xlu0 %263 }
 0x178   : > { %v265_v12 = vadd.f32 %v264_v11, %v260_v10 }
 0x17a   : > { %267 = vst.msk [vmem:[%s194_s24] sm:$0xff] %vm204_vm2, %v265_v12 }
 0x17b   : > { %v272_v14 = vpop.xlane.xlu0 %271 }
 0x17c   : > { %v273_v15 = vadd.f32 %v272_v14, %v268_v13 }
 0x17e   : > { %274 = vst.msk [vmem:[%s198_s27] sm:$0xff] %vm204_vm2, %v273_v15 }
 0x17f PF: > { %s14_s14 = sadd.s32 1, %s438_s14   ;;  %s509_s12 = smov %s434_s13 }
 0x180   : > { %p11_p5 = scmp.ge.s32.totalorder %s14_s14, 4   ;;  %s510_s13 = smov %s512_s15 }
 0x182   :  { %13 = sbr.rel (!%p11_p5) target bundleno = 2 (0x2), region = 74 }

// kernel: downsample_d.3
= control target key start
LH: loop header
LB: loop body
LE: loop exit
PB: predicated region body
PF: predicated region fallthrough
CT: control target
= control target key end

     0   :  { %v173_v0 = vmov 0.0   ;;  %vm174_vm0 = vmmov 0   ;;  %vm29_vm1 = vcmask 130048   ;;  %v175_v4 = vmov 0   ;;  %s222_s0 = inlined_call_operand.vmem [shape: bf16[2,16,64], index: 0, kind: input, shape index: {}]   ;;  %s223_s1 = inlined_call_operand.vmem [shape: bf16[8,16], index: 1, kind: input, shape index: {}]   ;;  %s224_s2 = inlined_call_operand.vmem [shape: f32[8,1], index: 2, kind: input, shape index: {}]   ;;  %s225_s3 = inlined_call_operand.vmem [shape: f32[8,1], index: 3, kind: input, shape index: {}]   ;;  %s226_s4 = inlined_call_operand.vmem [shape: f32[2,8,64], index: 4, kind: output, shape index: {}]  }
   0x1   :  { %155 = vmatprep.subr.bf16.mxu0 %v173_v0  ;;  %161 = vmatprep.subr.bf16.mxu1 %v173_v0  ;;  %v171_v1 = vld [vmem:[%s222_s0] sm:$0xff]   ;;  %v172_v2 = vld [vmem:[%s222_s0 + $0x8] sm:$0xff]   ;;  %vm85_vm2 = vcmask 523264  }
   0x2   :  { %157 = vmatprep.mubr.msk.bf16.mxu0 %vm174_vm0, %v173_v0  ;;  %163 = vmatprep.mubr.msk.bf16.mxu1 %vm174_vm0, %v173_v0  ;;  %v18_v3 = vld [vmem:[%s223_s1] sm:$0xf] }
   0x3   :  { %156 = vmatpush3.bf16.msra.mxu0 %v171_v1  ;;  %170 = vset.pattern.permute.xlu0 %v175_v4  ;;  %v19_v5 = vld [vmem:[%s224_s2] sm:$0xff] }
   0x4   :  { %162 = vmatpush3.bf16.msra.mxu1 %v172_v2  ;;  %75 = vperm.xlu0 %170, %v19_v5   ;;  %v20_v6 = vld [vmem:[%s225_s3] sm:$0xff] }
   0x6   :  { %158 = vmatmul.mubr.msk.bf16.vlgmr.msra.gmra.mrb[0].mxu0 %vm29_vm1, %v18_v3 }
   0x7   :  { %164 = vmatmul.mubr.msk.bf16.vlgmr.msra.gmra.mrb[0].mxu1 %vm29_vm1, %v18_v3 }
   0x8   :  { %81 = vperm.xlu0 %170, %v20_v6  }
  0x83   :  { %v76_v7 = vpop.permute.xlu0 %75 }
  0x87   :  { %v82_v8 = vpop.permute.xlu0 %81 }
  0xd9   :  { %v67_v9 = vpop.f32.mrb[0].mxu0 }
  0xda   :  { %v78_v10 = vmul.f32 %v76_v7, %v67_v9  ;;  %v130_v11 = vpop.f32.mrb[0].mxu1  ;;  %v159_v12 = vpop.f32.mrb[1].mxu0 }
  0xdb   :  { %v136_v13 = vmul.f32 %v130_v11, %v76_v7  ;;  %v165_v14 = vpop.f32.mrb[1].mxu1  ;;  %v70_v15 = vpop.f32.mrb[2].mxu0 }
  0xdc   :  { %v84_v16 = vadd.f32 %v82_v8, %v78_v10  ;;  %v133_v17 = vpop.f32.mrb[2].mxu1  ;;  %v160_v18 = vpop.f32.mrb[3].mxu0 }
  0xdd   :  { %v137_v19 = vadd.f32 %v136_v13, %v82_v8  ;;  %v166_v20 = vpop.f32.mrb[3].mxu1 }
  0xde   :  { %86 = vst.msk [vmem:[%s226_s4] sm:$0xff] %vm85_vm2, %v84_v16 }
  0xdf   :  { %150 = vst.msk [vmem:[%s226_s4 + $0x8] sm:$0xff] %vm85_vm2, %v137_v19 }

</bundles_post_ra>
